<compile_context>
chip_gen: v7x
topology: tpu7x:2x2x1
jax: 0.10.0
libtpu: 0.0.40
codegen_flags: <defaults>
</compile_context>

<pallas_src>
import numpy as np
import jax
import jax.numpy as jnp
from jax import lax
from jax.experimental import pallas as pl
from jax.experimental.pallas import tpu as pltpu

_LANE = 128
_TILE_B_MAX = 2048            # max lane columns per grid step (multiple of 128)
_VMEM_BLOCK_BUDGET = 16 << 20  # budget for double-buffered input blocks (v7x-safe)
_UNROLL_MAX = 32               # fully unroll the O(N^2) loops only up to this N


def _round_up(x: int, m: int) -> int:
    return ((x + m - 1) // m) * m


def _choose_tile_b(B: int, N: int) -> int:
    """Pick the lane-tile width: as big as useful, VMEM-safe, >=2 blocks if possible."""
    b_ceil = _round_up(B, _LANE)
    tile = min(_TILE_B_MAX, b_ceil)
    # Keep 2 inputs x 2 pipeline buffers x (N, TILE_B) f32 inside the budget
    # (comfortable even on v7x: 64 MiB physical / 32 MiB default-scoped VMEM).
    vmem_cap = max(_LANE, (_VMEM_BLOCK_BUDGET // (16 * N)) // _LANE * _LANE)
    tile = min(tile, vmem_cap)
    # Keep >= 2 grid steps when the batch allows it so the "parallel" axis has
    # work for both TensorCores on v7x (free on v5e/v6e).
    if b_ceil >= 2 * _LANE:
        tile = min(tile, _round_up(b_ceil // 2, _LANE))
    return max(tile, _LANE)


def _rmse_kernel(pred_ref, tgt_ref, out_ref):
    """One grid step processes TILE_B batch rows living on the lane axis."""
    x = pred_ref[...].astype(jnp.float32)   # (N, TILE_B) predictions
    t = tgt_ref[...].astype(jnp.float32)    # (N, TILE_B) targets
    n = x.shape[0]

    # Constant sublane index (i_idx[i, b] = i) for the stable tie-break.
    i_idx = lax.broadcasted_iota(jnp.int32, x.shape, 0)

    if n <= _UNROLL_MAX:
        # Fully unrolled: tiny loop bodies, everything stays in a few vregs.
        rank = jnp.zeros(x.shape, jnp.int32)
        for j in range(n):
            xj = x[j:j + 1, :]                             # (1, TILE_B)
            less = xj < x
            tie = jnp.logical_and(xj == x, i_idx > j)      # stable tie-break
            rank = rank + jnp.logical_or(less, tie).astype(jnp.int32)

        # Gather targets at each row's sorted position: t_at_rank[i] = t[rank[i]].
        t_at_rank = jnp.zeros_like(x)
        for k in range(n):
            t_at_rank = t_at_rank + jnp.where(rank == k, t[k:k + 1, :],
                                              jnp.float32(0.0))
    else:
        # Large N: bound vreg live ranges / compile time with fori_loop,
        # reading single rows straight from the VMEM refs.
        def rank_body(j, r):
            xj = pred_ref[pl.ds(j, 1), :].astype(jnp.float32)
            less = xj < x
            tie = jnp.logical_and(xj == x, i_idx > j)
            return r + jnp.logical_or(less, tie).astype(jnp.int32)

        rank = lax.fori_loop(0, n, rank_body,
                             jnp.zeros(x.shape, jnp.int32), unroll=8)

        def gather_body(k, acc):
            tk = tgt_ref[pl.ds(k, 1), :].astype(jnp.float32)
            return acc + jnp.where(rank == k, tk, jnp.float32(0.0))

        t_at_rank = lax.fori_loop(0, n, gather_body,
                                  jnp.zeros_like(x), unroll=8)

    # sum_k (sorted[k] - t[k])^2  ==  sum_i (x[i] - t[rank[i]])^2
    # -> a single cross-sublane (XLU) reduce instead of N of them.
    err = x - t_at_rank
    sq_sum = jnp.sum(err * err, axis=0, keepdims=True)     # (1, TILE_B)

    inv_sqrt_n = jnp.float32(1.0 / np.sqrt(n))
    out_ref[...] = jnp.sqrt(sq_sum) * inv_sqrt_n            # per-row RMSE, lane-dense


def rmse_loss(doa_predictions: jax.Array, doa: jax.Array) -> jax.Array:
    """Pallas implementation of RMSELoss.forward (method='sort')."""
    assert doa_predictions.shape == doa.shape
    B, N = doa_predictions.shape

    tile_b = _choose_tile_b(B, N)
    num_blocks = -(-B // tile_b)
    b_pad = num_blocks * tile_b

    # Batch on lanes: one fused XLA transpose(+pad) pass.  Pad only when needed.
    # TODO(synk): benchmark reading (TILE_B, N) blocks of the original layout and
    # transposing in-kernel (XLU) to drop this extra HBM pass entirely.
    pred_t = doa_predictions.T
    tgt_t = doa.T
    if b_pad != B:
        pred_t = jnp.pad(pred_t, ((0, 0), (0, b_pad - B)))
        tgt_t = jnp.pad(tgt_t, ((0, 0), (0, b_pad - B)))

    block_bytes = N * tile_b * 4
    vmem_limit = int(min(max(2 * (4 * block_bytes + 4 * tile_b * 4), 8 << 20),
                         32 << 20))

    per_row = pl.pallas_call(
        _rmse_kernel,
        out_shape=jax.ShapeDtypeStruct((1, b_pad), jnp.float32),
        grid_spec=pltpu.PrefetchScalarGridSpec(
            num_scalar_prefetch=0,
            grid=(num_blocks,),
            in_specs=[
                pl.BlockSpec((N, tile_b), lambda b: (0, b)),
                pl.BlockSpec((N, tile_b), lambda b: (0, b)),
            ],
            out_specs=pl.BlockSpec((1, tile_b), lambda b: (0, b)),
        ),
        compiler_params=pltpu.CompilerParams(
            # Blocks are independent (disjoint output lanes, no shared
            # accumulator) -> parallel; lets v7x use both TensorCores.
            dimension_semantics=("parallel",),
            vmem_limit_bytes=vmem_limit,
        ),
    )(pred_t, tgt_t)

    # Zero-padded lanes contribute exactly 0; one tiny XLA reduce.
    return jnp.sum(per_row)


def _reference(pred, tgt):
    sp = jnp.sort(pred, axis=1)
    err = sp - tgt
    n = pred.shape[1]
    return jnp.sum(jnp.sqrt(jnp.sum(err * err, axis=1)) / jnp.sqrt(jnp.float32(n)))


if __name__ == "__main__":
    key = jax.random.PRNGKey(0)

    def _check(B, N, k):
        k1, k2 = jax.random.split(k)
        preds = jax.random.uniform(k1, (B, N), jnp.float32,
                                   minval=-np.pi / 2, maxval=np.pi / 2)
        tgts = jax.random.uniform(k2, (B, N), jnp.float32,
                                  minval=-np.pi / 2, maxval=np.pi / 2)
        loss = rmse_loss(preds, tgts)
        jax.block_until_ready(loss)
        ref = _reference(preds, tgts)
        np.testing.assert_allclose(np.asarray(loss), np.asarray(ref),
                                   rtol=3e-5, atol=1e-4)

    keys = jax.random.split(key, 3)
    # Primary case matching the module's (batch_size, num_sources) DOA usage.
    _check(4, 8, keys[0])
    # Multi-block grid + lane-padding path.
    _check(300, 8, keys[1])
    # Large-N path (fori_loop rank-sort).
    _check(64, 48, keys[2])

    print("KERNEL_OK")
</pallas_src>

<mosaic_0001>
module attributes {stable_mosaic.version = 11 : i64} {
  func.func @_rmse_kernel(%arg0: i32, %arg1: memref<8x128xf32, #tpu.memory_space<vmem>>, %arg2: memref<8x128xf32, #tpu.memory_space<vmem>>, %arg3: memref<1x128xf32, #tpu.memory_space<vmem>>) attributes {dimension_semantics = [#tpu.dimension_semantics<parallel>], iteration_bounds = array<i64: 1>, scalar_prefetch = 0 : i64, scratch_operands = 0 : i64, tpu.core_type = #tpu.core_type<tc>, window_params = [{transform_indices = @transform_0, window_bounds = array<i64: 8, 128>}, {transform_indices = @transform_1, window_bounds = array<i64: 8, 128>}, {transform_indices = @transform_2, window_bounds = array<i64: 1, 128>}]} {
    %c0 = arith.constant 0 : index
    %c0_0 = arith.constant 0 : index
    %0 = vector.load %arg1[%c0, %c0_0] : memref<8x128xf32, #tpu.memory_space<vmem>>, vector<8x128xf32>
    %c0_1 = arith.constant 0 : index
    %c0_2 = arith.constant 0 : index
    %1 = vector.load %arg2[%c0_1, %c0_2] : memref<8x128xf32, #tpu.memory_space<vmem>>, vector<8x128xf32>
    %2 = tpu.iota {dimensions = array<i32: 0>} : vector<8x128xi32>
    %c0_i32 = arith.constant 0 : i32
    %3 = vector.broadcast %c0_i32 : i32 to vector<8x128xi32>
    %4 = vector.extract_strided_slice %0 {offsets = [0, 0], sizes = [1, 128], strides = [1, 1]} : vector<8x128xf32> to vector<1x128xf32>
    %5 = vector.broadcast %4 : vector<1x128xf32> to vector<8x128xf32>
    %6 = arith.cmpf olt, %5, %0 : vector<8x128xf32>
    %7 = vector.broadcast %4 : vector<1x128xf32> to vector<8x128xf32>
    %8 = arith.cmpf oeq, %7, %0 : vector<8x128xf32>
    %c0_i32_3 = arith.constant 0 : i32
    %9 = vector.broadcast %c0_i32_3 : i32 to vector<8x128xi32>
    %10 = arith.cmpi sgt, %2, %9 : vector<8x128xi32>
    %11 = arith.andi %8, %10 : vector<8x128xi1>
    %12 = arith.ori %6, %11 : vector<8x128xi1>
    %13 = arith.extui %12 : vector<8x128xi1> to vector<8x128xi32>
    %14 = arith.addi %3, %13 : vector<8x128xi32>
    %15 = vector.extract_strided_slice %0 {offsets = [1, 0], sizes = [1, 128], strides = [1, 1]} : vector<8x128xf32> to vector<1x128xf32>
    %16 = vector.broadcast %15 : vector<1x128xf32> to vector<8x128xf32>
    %17 = arith.cmpf olt, %16, %0 : vector<8x128xf32>
    %18 = vector.broadcast %15 : vector<1x128xf32> to vector<8x128xf32>
    %19 = arith.cmpf oeq, %18, %0 : vector<8x128xf32>
    %c1_i32 = arith.constant 1 : i32
    %20 = vector.broadcast %c1_i32 : i32 to vector<8x128xi32>
    %21 = arith.cmpi sgt, %2, %20 : vector<8x128xi32>
    %22 = arith.andi %19, %21 : vector<8x128xi1>
    %23 = arith.ori %17, %22 : vector<8x128xi1>
    %24 = arith.extui %23 : vector<8x128xi1> to vector<8x128xi32>
    %25 = arith.addi %14, %24 : vector<8x128xi32>
    %26 = vector.extract_strided_slice %0 {offsets = [2, 0], sizes = [1, 128], strides = [1, 1]} : vector<8x128xf32> to vector<1x128xf32>
    %27 = vector.broadcast %26 : vector<1x128xf32> to vector<8x128xf32>
    %28 = arith.cmpf olt, %27, %0 : vector<8x128xf32>
    %29 = vector.broadcast %26 : vector<1x128xf32> to vector<8x128xf32>
    %30 = arith.cmpf oeq, %29, %0 : vector<8x128xf32>
    %c2_i32 = arith.constant 2 : i32
    %31 = vector.broadcast %c2_i32 : i32 to vector<8x128xi32>
    %32 = arith.cmpi sgt, %2, %31 : vector<8x128xi32>
    %33 = arith.andi %30, %32 : vector<8x128xi1>
    %34 = arith.ori %28, %33 : vector<8x128xi1>
    %35 = arith.extui %34 : vector<8x128xi1> to vector<8x128xi32>
    %36 = arith.addi %25, %35 : vector<8x128xi32>
    %37 = vector.extract_strided_slice %0 {offsets = [3, 0], sizes = [1, 128], strides = [1, 1]} : vector<8x128xf32> to vector<1x128xf32>
    %38 = vector.broadcast %37 : vector<1x128xf32> to vector<8x128xf32>
    %39 = arith.cmpf olt, %38, %0 : vector<8x128xf32>
    %40 = vector.broadcast %37 : vector<1x128xf32> to vector<8x128xf32>
    %41 = arith.cmpf oeq, %40, %0 : vector<8x128xf32>
    %c3_i32 = arith.constant 3 : i32
    %42 = vector.broadcast %c3_i32 : i32 to vector<8x128xi32>
    %43 = arith.cmpi sgt, %2, %42 : vector<8x128xi32>
    %44 = arith.andi %41, %43 : vector<8x128xi1>
    %45 = arith.ori %39, %44 : vector<8x128xi1>
    %46 = arith.extui %45 : vector<8x128xi1> to vector<8x128xi32>
    %47 = arith.addi %36, %46 : vector<8x128xi32>
    %48 = vector.extract_strided_slice %0 {offsets = [4, 0], sizes = [1, 128], strides = [1, 1]} : vector<8x128xf32> to vector<1x128xf32>
    %49 = vector.broadcast %48 : vector<1x128xf32> to vector<8x128xf32>
    %50 = arith.cmpf olt, %49, %0 : vector<8x128xf32>
    %51 = vector.broadcast %48 : vector<1x128xf32> to vector<8x128xf32>
    %52 = arith.cmpf oeq, %51, %0 : vector<8x128xf32>
    %c4_i32 = arith.constant 4 : i32
    %53 = vector.broadcast %c4_i32 : i32 to vector<8x128xi32>
    %54 = arith.cmpi sgt, %2, %53 : vector<8x128xi32>
    %55 = arith.andi %52, %54 : vector<8x128xi1>
    %56 = arith.ori %50, %55 : vector<8x128xi1>
    %57 = arith.extui %56 : vector<8x128xi1> to vector<8x128xi32>
    %58 = arith.addi %47, %57 : vector<8x128xi32>
    %59 = vector.extract_strided_slice %0 {offsets = [5, 0], sizes = [1, 128], strides = [1, 1]} : vector<8x128xf32> to vector<1x128xf32>
    %60 = vector.broadcast %59 : vector<1x128xf32> to vector<8x128xf32>
    %61 = arith.cmpf olt, %60, %0 : vector<8x128xf32>
    %62 = vector.broadcast %59 : vector<1x128xf32> to vector<8x128xf32>
    %63 = arith.cmpf oeq, %62, %0 : vector<8x128xf32>
    %c5_i32 = arith.constant 5 : i32
    %64 = vector.broadcast %c5_i32 : i32 to vector<8x128xi32>
    %65 = arith.cmpi sgt, %2, %64 : vector<8x128xi32>
    %66 = arith.andi %63, %65 : vector<8x128xi1>
    %67 = arith.ori %61, %66 : vector<8x128xi1>
    %68 = arith.extui %67 : vector<8x128xi1> to vector<8x128xi32>
    %69 = arith.addi %58, %68 : vector<8x128xi32>
    %70 = vector.extract_strided_slice %0 {offsets = [6, 0], sizes = [1, 128], strides = [1, 1]} : vector<8x128xf32> to vector<1x128xf32>
    %71 = vector.broadcast %70 : vector<1x128xf32> to vector<8x128xf32>
    %72 = arith.cmpf olt, %71, %0 : vector<8x128xf32>
    %73 = vector.broadcast %70 : vector<1x128xf32> to vector<8x128xf32>
    %74 = arith.cmpf oeq, %73, %0 : vector<8x128xf32>
    %c6_i32 = arith.constant 6 : i32
    %75 = vector.broadcast %c6_i32 : i32 to vector<8x128xi32>
    %76 = arith.cmpi sgt, %2, %75 : vector<8x128xi32>
    %77 = arith.andi %74, %76 : vector<8x128xi1>
    %78 = arith.ori %72, %77 : vector<8x128xi1>
    %79 = arith.extui %78 : vector<8x128xi1> to vector<8x128xi32>
    %80 = arith.addi %69, %79 : vector<8x128xi32>
    %81 = vector.extract_strided_slice %0 {offsets = [7, 0], sizes = [1, 128], strides = [1, 1]} : vector<8x128xf32> to vector<1x128xf32>
    %82 = vector.broadcast %81 : vector<1x128xf32> to vector<8x128xf32>
    %83 = arith.cmpf olt, %82, %0 : vector<8x128xf32>
    %84 = vector.broadcast %81 : vector<1x128xf32> to vector<8x128xf32>
    %85 = arith.cmpf oeq, %84, %0 : vector<8x128xf32>
    %c7_i32 = arith.constant 7 : i32
    %86 = vector.broadcast %c7_i32 : i32 to vector<8x128xi32>
    %87 = arith.cmpi sgt, %2, %86 : vector<8x128xi32>
    %88 = arith.andi %85, %87 : vector<8x128xi1>
    %89 = arith.ori %83, %88 : vector<8x128xi1>
    %90 = arith.extui %89 : vector<8x128xi1> to vector<8x128xi32>
    %91 = arith.addi %80, %90 : vector<8x128xi32>
    %cst = arith.constant 0.000000e+00 : f32
    %92 = vector.broadcast %cst : f32 to vector<8x128xf32>
    %c0_i32_4 = arith.constant 0 : i32
    %93 = vector.broadcast %c0_i32_4 : i32 to vector<8x128xi32>
    %94 = arith.cmpi eq, %91, %93 : vector<8x128xi32>
    %95 = vector.extract_strided_slice %1 {offsets = [0, 0], sizes = [1, 128], strides = [1, 1]} : vector<8x128xf32> to vector<1x128xf32>
    %cst_5 = arith.constant 0.000000e+00 : f32
    %96 = vector.shape_cast %95 : vector<1x128xf32> to vector<1x128xf32>
    %97 = vector.broadcast %96 : vector<1x128xf32> to vector<8x128xf32>
    %98 = vector.broadcast %cst_5 : f32 to vector<8x128xf32>
    %99 = arith.select %94, %97, %98 : vector<8x128xi1>, vector<8x128xf32>
    %100 = arith.addf %92, %99 : vector<8x128xf32>
    %c1_i32_6 = arith.constant 1 : i32
    %101 = vector.broadcast %c1_i32_6 : i32 to vector<8x128xi32>
    %102 = arith.cmpi eq, %91, %101 : vector<8x128xi32>
    %103 = vector.extract_strided_slice %1 {offsets = [1, 0], sizes = [1, 128], strides = [1, 1]} : vector<8x128xf32> to vector<1x128xf32>
    %cst_7 = arith.constant 0.000000e+00 : f32
    %104 = vector.shape_cast %103 : vector<1x128xf32> to vector<1x128xf32>
    %105 = vector.broadcast %104 : vector<1x128xf32> to vector<8x128xf32>
    %106 = vector.broadcast %cst_7 : f32 to vector<8x128xf32>
    %107 = arith.select %102, %105, %106 : vector<8x128xi1>, vector<8x128xf32>
    %108 = arith.addf %100, %107 : vector<8x128xf32>
    %c2_i32_8 = arith.constant 2 : i32
    %109 = vector.broadcast %c2_i32_8 : i32 to vector<8x128xi32>
    %110 = arith.cmpi eq, %91, %109 : vector<8x128xi32>
    %111 = vector.extract_strided_slice %1 {offsets = [2, 0], sizes = [1, 128], strides = [1, 1]} : vector<8x128xf32> to vector<1x128xf32>
    %cst_9 = arith.constant 0.000000e+00 : f32
    %112 = vector.shape_cast %111 : vector<1x128xf32> to vector<1x128xf32>
    %113 = vector.broadcast %112 : vector<1x128xf32> to vector<8x128xf32>
    %114 = vector.broadcast %cst_9 : f32 to vector<8x128xf32>
    %115 = arith.select %110, %113, %114 : vector<8x128xi1>, vector<8x128xf32>
    %116 = arith.addf %108, %115 : vector<8x128xf32>
    %c3_i32_10 = arith.constant 3 : i32
    %117 = vector.broadcast %c3_i32_10 : i32 to vector<8x128xi32>
    %118 = arith.cmpi eq, %91, %117 : vector<8x128xi32>
    %119 = vector.extract_strided_slice %1 {offsets = [3, 0], sizes = [1, 128], strides = [1, 1]} : vector<8x128xf32> to vector<1x128xf32>
    %cst_11 = arith.constant 0.000000e+00 : f32
    %120 = vector.shape_cast %119 : vector<1x128xf32> to vector<1x128xf32>
    %121 = vector.broadcast %120 : vector<1x128xf32> to vector<8x128xf32>
    %122 = vector.broadcast %cst_11 : f32 to vector<8x128xf32>
    %123 = arith.select %118, %121, %122 : vector<8x128xi1>, vector<8x128xf32>
    %124 = arith.addf %116, %123 : vector<8x128xf32>
    %c4_i32_12 = arith.constant 4 : i32
    %125 = vector.broadcast %c4_i32_12 : i32 to vector<8x128xi32>
    %126 = arith.cmpi eq, %91, %125 : vector<8x128xi32>
    %127 = vector.extract_strided_slice %1 {offsets = [4, 0], sizes = [1, 128], strides = [1, 1]} : vector<8x128xf32> to vector<1x128xf32>
    %cst_13 = arith.constant 0.000000e+00 : f32
    %128 = vector.shape_cast %127 : vector<1x128xf32> to vector<1x128xf32>
    %129 = vector.broadcast %128 : vector<1x128xf32> to vector<8x128xf32>
    %130 = vector.broadcast %cst_13 : f32 to vector<8x128xf32>
    %131 = arith.select %126, %129, %130 : vector<8x128xi1>, vector<8x128xf32>
    %132 = arith.addf %124, %131 : vector<8x128xf32>
    %c5_i32_14 = arith.constant 5 : i32
    %133 = vector.broadcast %c5_i32_14 : i32 to vector<8x128xi32>
    %134 = arith.cmpi eq, %91, %133 : vector<8x128xi32>
    %135 = vector.extract_strided_slice %1 {offsets = [5, 0], sizes = [1, 128], strides = [1, 1]} : vector<8x128xf32> to vector<1x128xf32>
    %cst_15 = arith.constant 0.000000e+00 : f32
    %136 = vector.shape_cast %135 : vector<1x128xf32> to vector<1x128xf32>
    %137 = vector.broadcast %136 : vector<1x128xf32> to vector<8x128xf32>
    %138 = vector.broadcast %cst_15 : f32 to vector<8x128xf32>
    %139 = arith.select %134, %137, %138 : vector<8x128xi1>, vector<8x128xf32>
    %140 = arith.addf %132, %139 : vector<8x128xf32>
    %c6_i32_16 = arith.constant 6 : i32
    %141 = vector.broadcast %c6_i32_16 : i32 to vector<8x128xi32>
    %142 = arith.cmpi eq, %91, %141 : vector<8x128xi32>
    %143 = vector.extract_strided_slice %1 {offsets = [6, 0], sizes = [1, 128], strides = [1, 1]} : vector<8x128xf32> to vector<1x128xf32>
    %cst_17 = arith.constant 0.000000e+00 : f32
    %144 = vector.shape_cast %143 : vector<1x128xf32> to vector<1x128xf32>
    %145 = vector.broadcast %144 : vector<1x128xf32> to vector<8x128xf32>
    %146 = vector.broadcast %cst_17 : f32 to vector<8x128xf32>
    %147 = arith.select %142, %145, %146 : vector<8x128xi1>, vector<8x128xf32>
    %148 = arith.addf %140, %147 : vector<8x128xf32>
    %c7_i32_18 = arith.constant 7 : i32
    %149 = vector.broadcast %c7_i32_18 : i32 to vector<8x128xi32>
    %150 = arith.cmpi eq, %91, %149 : vector<8x128xi32>
    %151 = vector.extract_strided_slice %1 {offsets = [7, 0], sizes = [1, 128], strides = [1, 1]} : vector<8x128xf32> to vector<1x128xf32>
    %cst_19 = arith.constant 0.000000e+00 : f32
    %152 = vector.shape_cast %151 : vector<1x128xf32> to vector<1x128xf32>
    %153 = vector.broadcast %152 : vector<1x128xf32> to vector<8x128xf32>
    %154 = vector.broadcast %cst_19 : f32 to vector<8x128xf32>
    %155 = arith.select %150, %153, %154 : vector<8x128xi1>, vector<8x128xf32>
    %156 = arith.addf %148, %155 : vector<8x128xf32>
    %157 = arith.subf %0, %156 : vector<8x128xf32>
    %158 = arith.mulf %157, %157 : vector<8x128xf32>
    %cst_20 = arith.constant dense<0.000000e+00> : vector<128xf32>
    %159 = vector.multi_reduction <add>, %158, %cst_20 [0] : vector<8x128xf32> to vector<128xf32>
    %160 = vector.shape_cast %159 : vector<128xf32> to vector<1x128xf32>
    %161 = math.sqrt %160 : vector<1x128xf32>
    %cst_21 = arith.constant 0.353553385 : f32
    %162 = vector.broadcast %cst_21 : f32 to vector<1x128xf32>
    %163 = arith.mulf %161, %162 : vector<1x128xf32>
    %c0_22 = arith.constant 0 : index
    %c0_23 = arith.constant 0 : index
    %164 = vector.load %arg3[%c0_22, %c0_23] : memref<1x128xf32, #tpu.memory_space<vmem>>, vector<1x128xf32>
    tpu.vector_store %arg3[%c0_22, %c0_23], %163 {strides = array<i32>} : memref<1x128xf32, #tpu.memory_space<vmem>>, vector<1x128xf32>,
    return
  }
  func.func @transform_0(%arg0: i32) -> (i32, i32) {
    %c0_i32 = arith.constant 0 : i32
    %c0_i32_0 = arith.constant 0 : i32
    return %c0_i32, %arg0 : i32, i32
  }
  func.func @transform_1(%arg0: i32) -> (i32, i32) {
    %c0_i32 = arith.constant 0 : i32
    %c0_i32_0 = arith.constant 0 : i32
    return %c0_i32, %arg0 : i32, i32
  }
  func.func @transform_2(%arg0: i32) -> (i32, i32) {
    %c0_i32 = arith.constant 0 : i32
    %c0_i32_0 = arith.constant 0 : i32
    return %c0_i32, %arg0 : i32, i32
  }
}

</mosaic_0001>

<bundles_post_ra>
// kernel: tpu_custom_call.1
= control target key start
LH: loop header
LB: loop body
LE: loop exit
PB: predicated region body
PF: predicated region fallthrough
CT: control target
= control target key end

     0   :  { %7 = vsyncpa [#allocation3], 0  ;;  %s422_s0 = inlined_call_operand.hbm [shape: f32[8,128], index: 0, kind: input, shape index: {}]   ;;  %s423_s1 = inlined_call_operand.hbm [shape: f32[8,128], index: 1, kind: input, shape index: {}]   ;;  %s424_s2 = inlined_call_operand.hbm [shape: f32[1,128], index: 2, kind: output, shape index: {}]  }
   0x1   :  { %8 = vsyncpa [#allocation6], 0 }
   0x2   :  { %9 = vsyncpa [#allocation4], 0  ;;  %s294_s9 = smov [#allocation2]   ;;  %s295_s11 = smov [#allocation5]  }
   0x3   :  { %s16_s10 = sshll.u32 %s294_s9, 4  ;;  %s26_s12 = sshll.u32 %s295_s11, 4  ;;  %s17_s10 = int_to_ptr.vmem [resolvable:$true] %s16_s10  ;;  %s27_s12 = int_to_ptr.vmem [resolvable:$true] %s26_s12 }
   0x4   :  { %s222_s15 = scalar_lea.hbm %s422_s0, 128 }
   0x5   :  { %p223_p0 = scmp.ne.s32.totalorder %s422_s0, %s222_s15  ;;  %p226_p1 = scmp.lt.u32.totalorder %s222_s15, %s422_s0 }
   0x7   :  { %p228_p2 = pnand %p226_p1, %p223_p0 }
   0x9   :  { %231 = shalt.err (!%p228_p2)
}
   0xa   :  { %s232_s20 = scalar_lea.vmem %s17_s10, 128  ;;  %p237_p4 = scmp.lt.s32.totalorder %s17_s10, %s17_s10 }
   0xb   :  { %p233_p3 = scmp.ne.s32.totalorder %s17_s10, %s232_s20  ;;  %p238_p5 = scmp.lt.s32.totalorder %s232_s20, %s232_s20 }
   0xd   :  { %p239_p6 = por %p238_p5, %p237_p4 }
   0xf   :  { %p240_p7 = pnand %p239_p6, %p233_p3 }
  0x11   :  { %243 = shalt.err (!%p240_p7)
}
  0x12   :  { %19 = dma.hbm_to_vmem [thread:$0]  %s422_s0, 128, %s17_s10, [#allocation3]  }
  0x13   :  { %s244_s25 = scalar_lea.hbm %s423_s1, 128 }
  0x14   :  { %p245_p8 = scmp.ne.s32.totalorder %s423_s1, %s244_s25  ;;  %p248_p9 = scmp.lt.u32.totalorder %s244_s25, %s423_s1 }
  0x16   :  { %p250_p10 = pnand %p248_p9, %p245_p8 }
  0x18   :  { %253 = shalt.err (!%p250_p10)
}
  0x19   :  { %s254_s30 = scalar_lea.vmem %s27_s12, 128  ;;  %p259_p12 = scmp.lt.s32.totalorder %s27_s12, %s27_s12 }
  0x1a   :  { %p255_p11 = scmp.ne.s32.totalorder %s27_s12, %s254_s30  ;;  %p260_p13 = scmp.lt.s32.totalorder %s254_s30, %s254_s30 }
  0x1c   :  { %p261_p0 = por %p260_p13, %p259_p12 }
  0x1e   :  { %p262_p1 = pnand %p261_p0, %p255_p11 }
  0x20   :  { %265 = shalt.err (!%p262_p1)
}
  0x21   :  { %29 = dma.hbm_to_vmem [thread:$0]  %s423_s1, 128, %s27_s12, [#allocation6]  }
  0x22   :  { %288 = dma.done.wait [#allocation3], 128  }
  0x23   :  { %289 = vsyncadd [#allocation3], 4294967168 }
  0x24   :  { %290 = dma.done.wait [#allocation6], 128  }
  0x25   :  { %291 = vsyncadd [#allocation6], 4294967168  ;;  %v38_v0 = vlaneseq  ;;  %v343_v6 = vld [vmem:[#allocation2] sm:$0xff]  ;;  %v296_v15 = vmov 0   ;;  %v37_v30 = vld [vmem:[#allocation5] sm:$0xff]  ;;  %s297_s1 = smov [#allocation7]  }
  0x26   :  { %s206_s4 = sshll.u32 %s297_s1, 4  ;;  %s207_s4 = int_to_ptr.vmem [resolvable:$true] %s206_s4 }
  0x27   :  { %v337_v1 = vshrl.u32 %v38_v0, 7  ;;  %s266_s5 = scalar_lea.vmem %s207_s4, 16  ;;  %s270_s6 = scalar_lea.vmem %s207_s4, 32 }
  0x28   :  { %p267_p2 = scmp.ne.s32.totalorder %s207_s4, %s266_s5  ;;  %p271_p3 = scmp.lt.s32.totalorder %s207_s4, %s207_s4 }
  0x29   :  { %v42_v2 = vsub.s32 0, %v337_v1  ;;  %v52_v3 = vsub.s32 1, %v337_v1  ;;  %v63_v4 = vsub.s32 2, %v337_v1  ;;  %v74_v5 = vsub.s32 3, %v337_v1  ;;  %p272_p4 = scmp.lt.s32.totalorder %s270_s6, %s266_s5 }
  0x2a   :  { %vm46_vm0 = vcmp.gt.s32.totalorder %v337_v1, 0  ;;  %v85_v9 = vsub.s32 4, %v337_v1  ;;  %vm56_vm1 = vcmp.gt.s32.totalorder %v337_v1, 1  ;;  %v96_v11 = vsub.s32 5, %v337_v1 }
  0x2b   :  { %v43_v7 = vrot.slane %v343_v6, %v42_v2  ;;  %v53_v8 = vrot.slane %v343_v6, %v52_v3  ;;  %v64_v10 = vrot.slane %v343_v6, %v63_v4  ;;  %v75_v12 = vrot.slane %v343_v6, %v74_v5  ;;  %p273_p5 = por %p272_p4, %p271_p3 }
  0x2c   :  { %vm67_vm9 = vcmp.gt.s32.totalorder %v337_v1, 2  ;;  %v86_v13 = vrot.slane %v343_v6, %v85_v9  ;;  %v107_v14 = vsub.s32 6, %v337_v1  ;;  %vm78_vm14 = vcmp.gt.s32.totalorder %v337_v1, 3 }
  0x2d   :  { %vm44_vm2 = vcmp.lt.f32.partialorder %v43_v7, %v343_v6  ;;  %vm45_vm3 = vcmp.eq.f32.partialorder %v43_v7, %v343_v6  ;;  %vm55_vm4 = vcmp.eq.f32.partialorder %v53_v8, %v343_v6  ;;  %vm54_vm6 = vcmp.lt.f32.partialorder %v53_v8, %v343_v6  ;;  %p274_p6 = pnand %p273_p5, %p267_p2 }
  0x2e   :  { %vm47_vm5 = vmand %vm45_vm3, %vm46_vm0  ;;  %vm66_vm8 = vcmp.eq.f32.partialorder %v64_v10, %v343_v6  ;;  %vm65_vm11 = vcmp.lt.f32.partialorder %v64_v10, %v343_v6  ;;  %vm77_vm13 = vcmp.eq.f32.partialorder %v75_v12, %v343_v6  ;;  %v97_v17 = vrot.slane %v343_v6, %v96_v11 }
  0x2f   :  { %vm48_vm7 = vmor %vm44_vm2, %vm47_vm5  ;;  %v118_v18 = vsub.s32 7, %v337_v1  ;;  %vm76_vm0 = vcmp.lt.f32.partialorder %v75_v12, %v343_v6  ;;  %vm89_vm3 = vcmp.gt.s32.totalorder %v337_v1, 4  ;;  %v108_v21 = vrot.slane %v343_v6, %v107_v14 }
  0x30   :  { %v49_v16 = vsel %vm48_vm7, 1, %v296_v15  ;;  %vm57_vm10 = vmand %vm55_vm4, %vm56_vm1  ;;  %vm88_vm1 = vcmp.eq.f32.partialorder %v86_v13, %v343_v6  ;;  %vm87_vm5 = vcmp.lt.f32.partialorder %v86_v13, %v343_v6  ;;  %vm99_vm7 = vcmp.eq.f32.partialorder %v97_v17, %v343_v6 }
  0x31   :  { %vm58_vm12 = vmor %vm54_vm6, %vm57_vm10  ;;  %v119_v24 = vrot.slane %v343_v6, %v118_v18  ;;  %vm98_vm10 = vcmp.lt.f32.partialorder %v97_v17, %v343_v6  ;;  %v131_v35 = vrot.slane %v37_v30, %v42_v2  ;;  %v138_v36 = vrot.slane %v37_v30, %v52_v3 }
  0x32   :  { %v59_v19 = vsel %vm58_vm12, 1, %v296_v15  ;;  %vm68_vm15 = vmand %vm66_vm8, %vm67_vm9  ;;  %vm100_vm8 = vcmp.gt.s32.totalorder %v337_v1, 5  ;;  %vm110_vm12 = vcmp.eq.f32.partialorder %v108_v21, %v343_v6  ;;  %v145_v37 = vrot.slane %v37_v30, %v63_v4 }
  0x33   :  { %v60_v20 = vadd.s32 %v59_v19, %v49_v16  ;;  %vm69_vm2 = vmor %vm65_vm11, %vm68_vm15  ;;  %vm109_vm15 = vcmp.lt.f32.partialorder %v108_v21, %v343_v6  ;;  %v152_v39 = vrot.slane %v37_v30, %v74_v5  ;;  %v159_v43 = vrot.slane %v37_v30, %v85_v9 }
  0x34   :  { %v70_v22 = vsel %vm69_vm2, 1, %v296_v15  ;;  %vm79_vm4 = vmand %vm77_vm13, %vm78_vm14  ;;  %vm111_vm13 = vcmp.gt.s32.totalorder %v337_v1, 6  ;;  %vm120_vm2 = vcmp.lt.f32.partialorder %v119_v24, %v343_v6  ;;  %v166_v46 = vrot.slane %v37_v30, %v96_v11 }
  0x35   :  { %v71_v23 = vadd.s32 %v70_v22, %v60_v20  ;;  %vm80_vm6 = vmor %vm76_vm0, %vm79_vm4  ;;  %v125_v33 = vsel %vm120_vm2, 1, %v296_v15  ;;  %v173_v49 = vrot.slane %v37_v30, %v107_v14  ;;  %v180_v52 = vrot.slane %v37_v30, %v118_v18 }
  0x36   :  { %v81_v25 = vsel %vm80_vm6, 1, %v296_v15  ;;  %vm90_vm9 = vmand %vm88_vm1, %vm89_vm3 }
  0x37   :  { %v82_v26 = vadd.s32 %v81_v25, %v71_v23  ;;  %vm91_vm11 = vmor %vm87_vm5, %vm90_vm9 }
  0x38   :  { %v92_v27 = vsel %vm91_vm11, 1, %v296_v15  ;;  %vm101_vm14 = vmand %vm99_vm7, %vm100_vm8 }
  0x39   :  { %v93_v28 = vadd.s32 %v92_v27, %v82_v26  ;;  %vm102_vm0 = vmor %vm98_vm10, %vm101_vm14 }
  0x3a   :  { %v103_v29 = vsel %vm102_vm0, 1, %v296_v15  ;;  %vm112_vm4 = vmand %vm110_vm12, %vm111_vm13 }
  0x3b   :  { %v104_v31 = vadd.s32 %v103_v29, %v93_v28  ;;  %vm113_vm1 = vmor %vm109_vm15, %vm112_vm4 }
  0x3c   :  { %v114_v32 = vsel %vm113_vm1, 1, %v296_v15 }
  0x3d   :  { %v115_v34 = vadd.s32 %v114_v32, %v104_v31 }
  0x3f   :  { %v126_v38 = vadd.s32 %v125_v33, %v115_v34 }
  0x41   :  { %vm127_vm3 = vcmp.eq.s32.totalorder %v126_v38, 0  ;;  %vm134_vm5 = vcmp.eq.s32.totalorder %v126_v38, 1  ;;  %vm141_vm6 = vcmp.eq.s32.totalorder %v126_v38, 2  ;;  %vm148_vm7 = vcmp.eq.s32.totalorder %v126_v38, 3 }
  0x42   :  { %v132_v40 = vsel %vm127_vm3, %v131_v35, 0.0  ;;  %v139_v41 = vsel %vm134_vm5, %v138_v36, 0.0  ;;  %v146_v42 = vsel %vm141_vm6, %v145_v37, 0.0  ;;  %vm155_vm8 = vcmp.eq.s32.totalorder %v126_v38, 4 }
  0x43   :  { %v140_v44 = vadd.f32 %v139_v41, %v132_v40  ;;  %v153_v45 = vsel %vm148_vm7, %v152_v39, 0.0  ;;  %vm162_vm9 = vcmp.eq.s32.totalorder %v126_v38, 5  ;;  %v160_v48 = vsel %vm155_vm8, %v159_v43, 0.0 }
  0x44   :  { %vm169_vm10 = vcmp.eq.s32.totalorder %v126_v38, 6  ;;  %v167_v51 = vsel %vm162_vm9, %v166_v46, 0.0  ;;  %vm176_vm11 = vcmp.eq.s32.totalorder %v126_v38, 7 }
  0x45   :  { %v147_v47 = vadd.f32 %v146_v42, %v140_v44  ;;  %v174_v54 = vsel %vm169_vm10, %v173_v49, 0.0  ;;  %v181_v56 = vsel %vm176_vm11, %v180_v52, 0.0 }
  0x47   :  { %v154_v50 = vadd.f32 %v153_v45, %v147_v47 }
  0x49   :  { %v161_v53 = vadd.f32 %v160_v48, %v154_v50 }
  0x4b   :  { %v168_v55 = vadd.f32 %v167_v51, %v161_v53 }
  0x4d   :  { %v175_v57 = vadd.f32 %v174_v54, %v168_v55 }
  0x4f   :  { %v182_v58 = vadd.f32 %v181_v56, %v175_v57 }
  0x51   :  { %v183_v59 = vsub.f32 %v343_v6, %v182_v58 }
  0x53   :  { %v184_v60 = vmul.f32 %v183_v59, %v183_v59 }
  0x55   :  { %v185_v61 = vrot.slane %v184_v60, 4 }
  0x57   :  { %v186_v62 = vadd.f32 %v185_v61, %v184_v60 }
  0x59   :  { %v187_v63 = vrot.slane %v186_v62, 2 }
  0x5b   :  { %v188_v0 = vadd.f32 %v187_v63, %v186_v62 }
  0x5d   :  { %v189_v1 = vrot.slane %v188_v0, 1 }
  0x5f   :  { %v190_v2 = vadd.f32 %v189_v1, %v188_v0 }
  0x61   :  { %220 = vrsqrt.f32 %v190_v2  ;;  %vm193_vm12 = vcmp.eq.f32.partialorder %v190_v2, inf  ;;  %v196_v4 = vand.u32 2147483648, %v190_v2  ;;  %vm195_vm13 = vcmp.eq.f32.partialorder %v190_v2, 0.0 }
  0x6b   :  { %v221_v3 = vpop.eup %220 }
  0x6c   :  { %v192_v5 = vmul.f32 %v221_v3, %v190_v2 }
  0x6e   :  { %v194_v7 = vsel %vm193_vm12, %v190_v2, %v192_v5 }
  0x6f   :  { %v197_v8 = vsel %vm195_vm13, %v196_v4, %v194_v7 }
  0x70   :  { %v198_v9 = vmul.f32 0.35355338, %v197_v8 }
  0x72   :  { %199 = vst [vmem:[#allocation7] sm:$0x1] %v198_v9 }
  0x73   :  { %277 = shalt.err (!%p274_p6)
}
  0x74   :  { %s278_s9 = scalar_lea.hbm %s424_s2, 16 }
  0x75   :  { %p279_p7 = scmp.ne.s32.totalorder %s424_s2, %s278_s9  ;;  %p282_p8 = scmp.lt.u32.totalorder %s278_s9, %s424_s2 }
  0x77   :  { %p284_p9 = pnand %p282_p8, %p279_p7 }
  0x79   :  { %287 = shalt.err (!%p284_p9)
}
  0x7a   :  { %209 = dma.vmem_to_hbm [thread:$0]  %s207_s4, 16, %s424_s2, [#allocation4]  }
  0x7b   :  { %292 = dma.done.wait [#allocation4], 16  }
  0x7c   :  { %293 = vsyncadd [#allocation4], 4294967280 }
  0x7d   :  { %213 = vsyncpa [#allocation3], 1 }
  0x7e   :  { %214 = vsyncpa [#allocation6], 1 }
  0x7f   :  { %215 = vsyncpa [#allocation4], 1 }

</bundles_post_ra>
